<compile_context>
chip_gen: v7x
topology: tpu7x:2x2x1
jax: 0.10.0
libtpu: 0.0.40
codegen_flags: <defaults>
</compile_context>

<pallas_src>
import numpy as np
import jax
import jax.numpy as jnp
from jax.experimental import pallas as pl
from jax.experimental.pallas import tpu as pltpu

LOG2PI = float(np.log(2.0 * np.pi))


def _diag_normal_nll_kernel(x_ref, mu_ref, logsig_ref, out_ref):
    # x_ref / mu_ref / logsig_ref: (bB, tT, C);  out_ref: (bB, tT)
    C = x_ref.shape[-1]
    x = x_ref[...].astype(jnp.float32)
    mu = mu_ref[...].astype(jnp.float32)
    logsigma = jnp.clip(logsig_ref[...].astype(jnp.float32), -7.0, 5.0)

    z = (x - mu) * jnp.exp(-logsigma)                        # mul, not divide
    per_row = jnp.sum(0.5 * (z * z) + logsigma, axis=-1)     # (bB, tT)
    out_ref[...] = (per_row + jnp.float32(0.5 * C * LOG2PI)).astype(out_ref.dtype)


def diag_normal_nll(x: jax.Array, params: jax.Array, *,
                    time_block=None,
                    vmem_limit_bytes=32 * 1024 * 1024) -> jax.Array:
    """Negative log likelihood of a diagonal normal.

    Args:
        x:      [batch, time, channel]
        params: [batch, time, 2*channel]
    Returns:
        nll:    [batch, time]  (float32)
    """
    B, T, C = x.shape
    assert params.shape == (B, T, 2 * C), (x.shape, params.shape)

    # Batch tile: sublane-dense output stores (full B when B < 8, else 8).
    bB = B if B < 8 else 8
    grid_b = pl.cdiv(B, bB)

    # Time tile: keep double-buffered inputs within ~12 MiB, and keep the tile
    # a multiple of 128 (lane-dense output) whenever it does not cover all of T.
    if time_block is None:
        per_t_bytes = 2 * bB * C * (x.dtype.itemsize + 2 * params.dtype.itemsize)
        tT = int((12 * 1024 * 1024) // max(per_t_bytes, 1))
    else:
        tT = int(time_block)
    if tT < T:
        tT = max(128, (tT // 128) * 128)
    tT = min(tT, T)
    grid_t = pl.cdiv(T, tT)

    if C % 128 == 0:
        # BlockSpec-level mu/logsigma split: two lane-aligned views of `params`.
        in_specs = [
            pl.BlockSpec((bB, tT, C), lambda b, t: (b, t, 0)),  # x
            pl.BlockSpec((bB, tT, C), lambda b, t: (b, t, 0)),  # mu half
            pl.BlockSpec((bB, tT, C), lambda b, t: (b, t, 1)),  # logsigma half
        ]
        operands = (x, params, params)
    else:
        # Unaligned C: split once in the wrapper so each block's last dim equals
        # the full array last dim (always (8,128)-legal).
        mu, logsigma = jnp.split(params, 2, axis=-1)
        in_specs = [
            pl.BlockSpec((bB, tT, C), lambda b, t: (b, t, 0)),
            pl.BlockSpec((bB, tT, C), lambda b, t: (b, t, 0)),
            pl.BlockSpec((bB, tT, C), lambda b, t: (b, t, 0)),
        ]
        operands = (x, mu, logsigma)

    return pl.pallas_call(
        _diag_normal_nll_kernel,
        out_shape=jax.ShapeDtypeStruct((B, T), jnp.float32),
        grid_spec=pltpu.PrefetchScalarGridSpec(
            num_scalar_prefetch=0,
            grid=(grid_b, grid_t),
            in_specs=in_specs,
            out_specs=pl.BlockSpec((bB, tT), lambda b, t: (b, t)),
        ),
        compiler_params=pltpu.CompilerParams(
            dimension_semantics=("parallel", "parallel"),
            vmem_limit_bytes=vmem_limit_bytes,
        ),
    )(*operands)


def diag_normal_nll_ref(x, params):
    """Pure-JAX reference mirroring the PyTorch forward."""
    C = x.shape[-1]
    mu = params[..., :C]
    logsigma = jnp.clip(params[..., C:], -7.0, 5.0)
    loglik = 0.5 * (((x - mu) / jnp.exp(logsigma)) ** 2 + LOG2PI) + logsigma
    return loglik.sum(-1)


if __name__ == "__main__":
    key = jax.random.PRNGKey(0)
    k1, k2, k3, k4 = jax.random.split(key, 4)

    # Case 1: lane-aligned channels, tiled time axis — exercises the
    # BlockSpec-level mu/logsigma split and the 2-D pipelined grid.
    B, T, C = 2, 256, 128
    x = jax.random.normal(k1, (B, T, C), dtype=jnp.float32)
    params = jax.random.normal(k2, (B, T, 2 * C), dtype=jnp.float32)
    nll = jax.block_until_ready(diag_normal_nll(x, params, time_block=128))
    np.testing.assert_allclose(
        np.asarray(nll), np.asarray(diag_normal_nll_ref(x, params)),
        rtol=1e-5, atol=1e-4)

    # Case 2: small, non-128-aligned channel count — exercises the wrapper-side
    # split fallback with full-extent blocks.
    B2, T2, C2 = 2, 16, 16
    x2 = jax.random.normal(k3, (B2, T2, C2), dtype=jnp.float32)
    params2 = jax.random.normal(k4, (B2, T2, 2 * C2), dtype=jnp.float32)
    nll2 = jax.block_until_ready(diag_normal_nll(x2, params2))
    np.testing.assert_allclose(
        np.asarray(nll2), np.asarray(diag_normal_nll_ref(x2, params2)),
        rtol=1e-5, atol=1e-4)

    print("KERNEL_OK")
</pallas_src>

<mosaic_0001>
module attributes {stable_mosaic.version = 11 : i64} {
  func.func @_diag_normal_nll_kernel(%arg0: i32, %arg1: i32, %arg2: memref<2x128x128xf32, #tpu.memory_space<vmem>>, %arg3: memref<2x128x128xf32, #tpu.memory_space<vmem>>, %arg4: memref<2x128x128xf32, #tpu.memory_space<vmem>>, %arg5: memref<2x128xf32, #tpu.memory_space<vmem>>) attributes {dimension_semantics = [#tpu.dimension_semantics<parallel>, #tpu.dimension_semantics<parallel>], iteration_bounds = array<i64: 1, 2>, scalar_prefetch = 0 : i64, scratch_operands = 0 : i64, tpu.core_type = #tpu.core_type<tc>, window_params = [{transform_indices = @transform_0, window_bounds = array<i64: 2, 128, 128>}, {transform_indices = @transform_1, window_bounds = array<i64: 2, 128, 128>}, {transform_indices = @transform_2, window_bounds = array<i64: 2, 128, 128>}, {transform_indices = @transform_3, window_bounds = array<i64: 2, 128>}]} {
    %c0 = arith.constant 0 : index
    %c0_0 = arith.constant 0 : index
    %c0_1 = arith.constant 0 : index
    %0 = vector.load %arg2[%c0, %c0_0, %c0_1] : memref<2x128x128xf32, #tpu.memory_space<vmem>>, vector<2x128x128xf32>
    %c0_2 = arith.constant 0 : index
    %c0_3 = arith.constant 0 : index
    %c0_4 = arith.constant 0 : index
    %1 = vector.load %arg3[%c0_2, %c0_3, %c0_4] : memref<2x128x128xf32, #tpu.memory_space<vmem>>, vector<2x128x128xf32>
    %c0_5 = arith.constant 0 : index
    %c0_6 = arith.constant 0 : index
    %c0_7 = arith.constant 0 : index
    %2 = vector.load %arg4[%c0_5, %c0_6, %c0_7] : memref<2x128x128xf32, #tpu.memory_space<vmem>>, vector<2x128x128xf32>
    %cst = arith.constant -7.000000e+00 : f32
    %cst_8 = arith.constant 5.000000e+00 : f32
    %3 = vector.broadcast %cst : f32 to vector<2x128x128xf32>
    %4 = arith.maximumf %3, %2 : vector<2x128x128xf32>
    %5 = vector.broadcast %cst_8 : f32 to vector<2x128x128xf32>
    %6 = arith.minimumf %5, %4 : vector<2x128x128xf32>
    %7 = arith.subf %0, %1 : vector<2x128x128xf32>
    %cst_9 = arith.constant 0.000000e+00 : f32
    %8 = vector.broadcast %cst_9 : f32 to vector<2x128x128xf32>
    %9 = arith.subf %8, %6 : vector<2x128x128xf32>
    %10 = math.exp %9 : vector<2x128x128xf32>
    %11 = arith.mulf %7, %10 : vector<2x128x128xf32>
    %12 = arith.mulf %11, %11 : vector<2x128x128xf32>
    %cst_10 = arith.constant 5.000000e-01 : f32
    %13 = vector.broadcast %cst_10 : f32 to vector<2x128x128xf32>
    %14 = arith.mulf %13, %12 : vector<2x128x128xf32>
    %15 = arith.addf %14, %6 : vector<2x128x128xf32>
    %cst_11 = arith.constant dense<0.000000e+00> : vector<2x128xf32>
    %16 = vector.multi_reduction <add>, %15, %cst_11 [2] : vector<2x128x128xf32> to vector<2x128xf32>
    %cst_12 = arith.constant 117.62413 : f32
    %17 = vector.broadcast %cst_12 : f32 to vector<2x128xf32>
    %18 = arith.addf %16, %17 : vector<2x128xf32>
    %c0_13 = arith.constant 0 : index
    %c0_14 = arith.constant 0 : index
    %19 = vector.load %arg5[%c0_13, %c0_14] : memref<2x128xf32, #tpu.memory_space<vmem>>, vector<2x128xf32>
    tpu.vector_store %arg5[%c0_13, %c0_14], %18 {strides = array<i32>} : memref<2x128xf32, #tpu.memory_space<vmem>>, vector<2x128xf32>,
    return
  }
  func.func @transform_0(%arg0: i32, %arg1: i32) -> (i32, i32, i32) {
    %c0_i32 = arith.constant 0 : i32
    %c0_i32_0 = arith.constant 0 : i32
    return %arg0, %arg1, %c0_i32 : i32, i32, i32
  }
  func.func @transform_1(%arg0: i32, %arg1: i32) -> (i32, i32, i32) {
    %c0_i32 = arith.constant 0 : i32
    %c0_i32_0 = arith.constant 0 : i32
    return %arg0, %arg1, %c0_i32 : i32, i32, i32
  }
  func.func @transform_2(%arg0: i32, %arg1: i32) -> (i32, i32, i32) {
    %c1_i32 = arith.constant 1 : i32
    %c0_i32 = arith.constant 0 : i32
    return %arg0, %arg1, %c1_i32 : i32, i32, i32
  }
  func.func @transform_3(%arg0: i32, %arg1: i32) -> (i32, i32) {
    %c0_i32 = arith.constant 0 : i32
    return %arg0, %arg1 : i32, i32
  }
}

</mosaic_0001>

<bundles_post_ra>
// kernel: tpu_custom_call.1
= control target key start
LH: loop header
LB: loop body
LE: loop exit
PB: predicated region body
PF: predicated region fallthrough
CT: control target
= control target key end

     0   :  { %s2336_s0 = inlined_call_operand.hbm [shape: f32[2,256,128], index: 0, kind: input, shape index: {}]   ;;  %s2337_s1 = inlined_call_operand.hbm [shape: f32[2,256,256], index: 1, kind: input, shape index: {}]   ;;  %s2338_s2 = inlined_call_operand.hbm [shape: f32[2,256,256], index: 2, kind: input, shape index: {}]   ;;  %s2339_s3 = inlined_call_operand.hbm [shape: f32[2,256], index: 3, kind: output, shape index: {}]  }
   0x1   :  { %2340 = sst [smem:[#allocation21_spill]] %s2336_s0 }
   0x2   :  { %2341 = sst [smem:[#allocation22_spill]] %s2337_s1 }
   0x3   :  { %8 = vsyncpa [#allocation3], 0 }
   0x4   :  { %10 = vsyncpa [#allocation3 + $0x1], 0 }
   0x5   :  { %11 = vsyncpa [#allocation6], 0 }
   0x6   :  { %13 = vsyncpa [#allocation6 + $0x1], 0 }
   0x7   :  { %14 = vsyncpa [#allocation4], 0 }
   0x8   :  { %16 = vsyncpa [#allocation4 + $0x1], 0  ;;  %s1594_s12 = smov 0   ;;  %s1596_s13 = smov 0  }
   0x9   :  { %s1598_s14 = smov 0   ;;  %s1600_s15 = smov 0  }
   0xa   :  { %s1602_s16 = smov 0   ;;  %s1604_s17 = smov 0  }
   0xb LB: > { %s1625_s18 = sadd.s32 4294967295, %s1551_s17   ;;  %s1267_s19 = sadd.s32 4294967294, %s1551_s17   ;;  %s1551_s17 = sphi %s1604_s17, %s22_s17   ;;  %s1547_s16 = sphi %s1602_s16, %s2352_s16   ;;  %s1543_s15 = sphi %s1600_s15, %s2351_s15   ;;  %s1539_s14 = sphi %s1598_s14, %s2350_s14   ;;  %s1535_s13 = sphi %s1596_s13, %s2349_s13   ;;  %s1531_s12 = sphi %s1594_s12, %s2348_s12  }
   0xc   : > { %s31_s20 = sadd.s32 1, %s1547_s16  ;;  %s43_s21 = sadd.s32 1, %s1539_s14 }
   0xd   : > { %p32_p0 = scmp.ge.s32.totalorder %s31_s20, 2  ;;  %p50_p1 = scmp.ne.s32.totalorder %s1539_s14, %s1535_s13 }
   0xe   : > { %p51_p2 = scmp.eq.s32.totalorder %s1551_s17, 0  ;;  %p56_p3 = scmp.ne.s32.totalorder %s1535_s13, %s1531_s12 }
   0xf   : > { %s2354_s20 = smov (%p32_p0, %s31_s20), 0  ;;  %p57_p5 = scmp.eq.s32.totalorder %s1625_s18, 0 }
  0x10   : > { %p1637_p4 = por %p51_p2, %p50_p1  ;;  %s39_s23 = ssub.s32 %s1547_s16, %s2354_s20 }
  0x11   : > { %p138_p6 = scmp.eq.s32.totalorder %s1625_s18, 1  ;;  %p41_p7 = scmp.eq.s32.totalorder %s39_s23, 0 }
  0x12   : > { %p1645_p8 = por %p57_p5, %p56_p3  ;;  %p144_p10 = scmp.eq.s32.totalorder %s1267_s19, 1 }
  0x13   : > { %p1649_p9 = por %p138_p6, %p50_p1  ;;  %p1269_p12 = scmp.ge.s32.totalorder %s1551_s17, 2 }
  0x14   : > { %s1654_s26 = scalar_select %p41_p7, %s1539_s14, %s43_s21  }
  0x15   : > { %p1656_p11 = por %p144_p10, %p56_p3  ;;  %160 = sbr.rel (%p1269_p12) target bundleno = 69 (0x45), region = 16 }
  0x1c   : > { %s164_s28 = sand.u32 1, %s1539_s14   ;;  %s1295_s29 = sshll.u32 %s1547_s16, 11 }
  0x1d   : > { %s1665_s30 = sshll.u32 %s164_s28, 8  ;;  %s2346_s0 = sld [smem:[#allocation21_spill]] }
  0x1e   : > { %s1299_s7 = scalar_select %p1637_p4, [#allocation0], [#allocation15] }
  0x1f   : > { %s168_s8 = scalar_lea.vmem [#allocation2], %s1665_s30  ;;  %s1553_s11 = smov 4096  }
  0x20   : > { %s190_s9 = sshll.u32 %s168_s8, 4  ;;  %s182_s10 = sld [smem:[%s1299_s7]]   ;;  %s191_s9 = int_to_ptr.vmem [resolvable:$true] %s190_s9 }
  0x21   : > { %1300 = sst [smem:[#allocation10]] (%p1637_p4), %s1553_s11  ;;  %s1554_s19 = smov 2048  }
  0x22   : > { %1301 = sst [smem:[#allocation10 + $0x1]] (%p1637_p4), %s1554_s19  ;;  %s1555_s21 = smov 16  }
  0x23   : > { %s177_s6 = scalar_lea.hbm %s2346_s0, %s1295_s29  ;;  %1302 = sst [smem:[#allocation10 + $0x2]] (%p1637_p4), %s1555_s21 }
  0x24   : > { %s1556_s23 = smov 128   ;;  %s1557_s4 = smov 8  }
  0x25   : > { %1303 = sst [smem:[#allocation10 + $0x3]] (%p1637_p4), %s1556_s23  ;;  %s165_s7 = scalar_lea.sflag [#allocation3], %s164_s28 }
  0x26   : > { %1304 = sst [smem:[#allocation10 + $0x4]] (%p1637_p4), %s1556_s23  ;;  %s1273_s29 = sshll.u32 %s182_s10, 26 }
  0x27   : > { %1305 = sst [smem:[#allocation10 + $0x5]] (%p1637_p4), %s1557_s4  ;;  %s1274_s5 = sadd.s32 134217728, %s1273_s29 }
  0x28   : > { %s1558_s8 = smov [#allocation9]  }
  0x29   : > { %1306 = dma.general (%p1637_p4), %s177_s6, 4096, %s191_s9, %s165_s7, %s1558_s8, [#allocation10], %s1274_s5, 0  }
  0x2a   : > { %s213_s11 = sand.u32 1, %s1551_s17   ;;  %s1297_s19 = sshll.u32 %s1547_s16, 12 }
  0x2b   : > { %s2347_s1 = sld [smem:[#allocation22_spill]]  ;;  %s217_s29 = scalar_lea.vmem [#allocation5], %s1665_s30 }
  0x2c   : > { %s240_s28 = sshll.u32 %s217_s29, 4  ;;  %s1559_s4 = smov 8192   ;;  %s241_s28 = int_to_ptr.vmem [resolvable:$true] %s240_s28 }
  0x2d   : > { %s1307_s6 = scalar_select %p1637_p4, [#allocation0], [#allocation16] }
  0x2e   : > { %1308 = sst [smem:[#allocation12]] (%p1637_p4), %s1559_s4  ;;  %s1560_s5 = smov 2048  }
  0x2f   : > { %s232_s9 = sld [smem:[%s1307_s6]]   ;;  %s1561_s7 = smov 16  }
  0x30   : > { %1309 = sst [smem:[#allocation12 + $0x1]] (%p1637_p4), %s1560_s5  ;;  %s1562_s8 = smov 256  }
  0x31   : > { %s227_s23 = scalar_lea.hbm %s2347_s1, %s1297_s19  ;;  %1310 = sst [smem:[#allocation12 + $0x2]] (%p1637_p4), %s1561_s7 }
  0x32   : > { %1311 = sst [smem:[#allocation12 + $0x3]] (%p1637_p4), %s1562_s8  ;;  %s1563_s21 = smov 128  }
  0x33   : > { %1312 = sst [smem:[#allocation12 + $0x4]] (%p1637_p4), %s1563_s21  ;;  %s1564_s29 = smov 8  }
  0x34   : > { %1313 = sst [smem:[#allocation12 + $0x5]] (%p1637_p4), %s1564_s29  ;;  %s214_s0 = scalar_lea.sflag [#allocation6], %s213_s11 }
  0x35   : > { %s1279_s10 = sshll.u32 %s232_s9, 26  ;;  %s1565_s1 = smov [#allocation11]  }
  0x36   : > { %s1280_s6 = sadd.s32 134217728, %s1279_s10 }
  0x37   : > { %1314 = dma.general (%p1637_p4), %s227_s23, 4096, %s241_s28, %s214_s0, %s1565_s1, [#allocation12], %s1280_s6, 0  }
  0x38   : > { %s1183_s7 = scalar_lea.hbm %s2338_s2, %s1297_s19  ;;  %s267_s8 = scalar_lea.vmem [#allocation7], %s1665_s30 }
  0x39   : > { %s1184_s9 = scalar_lea.hbm %s1183_s7, 128  ;;  %s291_s21 = sshll.u32 %s267_s8, 4  ;;  %s292_s21 = int_to_ptr.vmem [resolvable:$true] %s291_s21 }
  0x3a   : > { %s1315_s11 = scalar_select %p1637_p4, [#allocation0], [#allocation17] }
  0x3b   : > { %s1566_s1 = smov 8192   ;;  %s1567_s23 = smov 2048  }
  0x3c   : > { %s283_s10 = sld [smem:[%s1315_s11]]   ;;  %s1568_s28 = smov 16  }
  0x3d   : > { %1316 = sst [smem:[#allocation14]] (%p1637_p4), %s1566_s1  ;;  %s1569_s19 = smov 256  }
  0x3e   : > { %1317 = sst [smem:[#allocation14 + $0x1]] (%p1637_p4), %s1567_s23  ;;  %s1570_s30 = smov 128  }
  0x3f   : > { %1318 = sst [smem:[#allocation14 + $0x2]] (%p1637_p4), %s1568_s28  ;;  %s1571_s6 = smov 8  }
  0x40   : > { %1319 = sst [smem:[#allocation14 + $0x3]] (%p1637_p4), %s1569_s19  ;;  %s1572_s5 = smov [#allocation13]  }
  0x41   : > { %1320 = sst [smem:[#allocation14 + $0x4]] (%p1637_p4), %s1570_s30 }
  0x42   : > { %s1284_s29 = sshll.u32 %s283_s10, 26  ;;  %1321 = sst [smem:[#allocation14 + $0x5]] (%p1637_p4), %s1571_s6 }
  0x43   : > { %s1285_s4 = sadd.s32 134217728, %s1284_s29 }
  0x44   : > { %1322 = dma.general (%p1637_p4), %s1184_s9, 4096, %s292_s21, %s214_s0, %s1572_s5, [#allocation14], %s1285_s4, 0  }
  0x45 PF: > { %p1286_p13 = scmp.ge.s32.totalorder %s1551_s17, 1  ;;  %p312_p0 = scmp.lt.s32.totalorder %s1551_s17, 3 }
  0x47   : > { %p313_p1 = pnand %p1286_p13, %p312_p0 }
  0x48   : > { %s1732_s7 = sand.u32 (!%p313_p1), 1, %s1535_s13  }
  0x49   : > { %316 = sbr.rel (%p313_p1) target bundleno = 343 (0x157), region = 32  ;;  %s1287_s8 = sshll.u32 (!%p313_p1), %s1732_s7, 8 }
  0x4a   : > { %s319_s11 = scalar_lea.sflag (!%p313_p1), [#allocation3], %s1732_s7  ;;  %s1736_s10 = scalar_lea.vmem (!%p313_p1), [#allocation2], %s1287_s8 }
  0x50   : > { %1518 = dma.done.wait (%p1645_p8), %s319_s11, 4096  }
  0x51   : > { %1520 = vsyncadd (%p1645_p8), %s319_s11, 4294963200  ;;  %s327_s0 = sand.u32 1, %s1625_s18   ;;  %s1743_s9 = scalar_lea.vmem [#allocation5], %s1287_s8 }
  0x52   : > { %s328_s22 = scalar_lea.sflag [#allocation6], %s327_s0 }
  0x53   : > { %1522 = dma.done.wait (%p1645_p8), %s328_s22, 8192  }
  0x54   : > { %1524 = vsyncadd (%p1645_p8), %s328_s22, 4294959104  ;;  %s1749_s21 = scalar_lea.vmem [#allocation7], %s1287_s8  ;;  %v1754_v3 = vld [vmem:[%s1736_s10 + $0x80] sm:$0xff]  ;;  %v1776_v17 = vld [vmem:[%s1736_s10 + $0x88] sm:$0xff]  ;;  %vm934_vm0 = vcmask 130112   ;;  %vm941_vm1 = vcmask 195712  }
  0x55   : > { %v459_v0 = vld [vmem:[%s1749_s21 + $0x80] sm:$0xff]  ;;  %v460_v6 = vld [vmem:[%s1749_s21 + $0x88] sm:$0xff]  ;;  %v461_v14 = vld [vmem:[%s1749_s21 + $0x90] sm:$0xff]  ;;  %vm948_vm2 = vcmask 261312   ;;  %vm955_vm3 = vcmask 326912   ;;  %vm962_vm4 = vcmask 392512  }
  0x56   : > { %v491_v1 = vmax.f32 %v459_v0, -7.0  ;;  %v443_v2 = vld [vmem:[%s1749_s21] sm:$0xff]  ;;  %v492_v10 = vmax.f32 %v460_v6, -7.0  ;;  %v444_v11 = vld [vmem:[%s1749_s21 + $0x8] sm:$0xff]  ;;  %v493_v20 = vmax.f32 %v461_v14, -7.0  ;;  %v445_v21 = vld [vmem:[%s1749_s21 + $0x10] sm:$0xff] }
  0x57   : > { %v1757_v4 = vld [vmem:[%s1743_s9 + $0x80] sm:$0xff]  ;;  %v475_v5 = vmax.f32 %v443_v2, -7.0  ;;  %v476_v13 = vmax.f32 %v444_v11, -7.0  ;;  %v1779_v18 = vld [vmem:[%s1743_s9 + $0x88] sm:$0xff]  ;;  %v477_v25 = vmax.f32 %v445_v21, -7.0  ;;  %v462_v26 = vld [vmem:[%s1749_s21 + $0x98] sm:$0xff] }
  0x58   : > { %v1760_v7 = vmin.f32 %v491_v1, 5.0  ;;  %v1763_v8 = vld [vmem:[%s1736_s10] sm:$0xff]  ;;  %v555_v15 = vsub.f32 %v1754_v3, %v1757_v4  ;;  %v1781_v19 = vmin.f32 %v492_v10, 5.0  ;;  %v1792_v29 = vld [vmem:[%s1736_s10 + $0x8] sm:$0xff]  ;;  %v1794_v30 = vmin.f32 %v493_v20, 5.0  ;;  %v446_v37 = vld [vmem:[%s1749_s21 + $0x18] sm:$0xff] }
  0x59   : > { %v1766_v9 = vld [vmem:[%s1743_s9] sm:$0xff]  ;;  %v1769_v12 = vmin.f32 %v475_v5, 5.0  ;;  %v1787_v24 = vmin.f32 %v476_v13, 5.0  ;;  %v494_v31 = vmax.f32 %v462_v26, -7.0  ;;  %v556_v33 = vsub.f32 %v1776_v17, %v1779_v18  ;;  %v1799_v34 = vld [vmem:[%s1743_s9 + $0x8] sm:$0xff]  ;;  %v1806_v39 = vld [vmem:[%s1736_s10 + $0x90] sm:$0xff] }
  0x5a   : > { %v587_v16 = vsub.f32 0.0, %v1760_v7  ;;  %v539_v22 = vsub.f32 %v1763_v8, %v1766_v9  ;;  %v588_v28 = vsub.f32 0.0, %v1781_v19  ;;  %v1802_v36 = vmin.f32 %v477_v25, 5.0  ;;  %v1809_v40 = vld [vmem:[%s1743_s9 + $0x90] sm:$0xff]  ;;  %v463_v47 = vld [vmem:[%s1749_s21 + $0xa0] sm:$0xff]  ;;  %v1825_v51 = vld [vmem:[%s1736_s10 + $0x98] sm:$0xff] }
  0x5b   : > { %v571_v23 = vsub.f32 0.0, %v1769_v12  ;;  %v572_v35 = vsub.f32 0.0, %v1787_v24  ;;  %v589_v41 = vsub.f32 0.0, %v1794_v30  ;;  %v1812_v42 = vmin.f32 %v494_v31, 5.0  ;;  %v1815_v44 = vld [vmem:[%s1736_s10 + $0x10] sm:$0xff]  ;;  %v447_v53 = vld [vmem:[%s1749_s21 + $0x20] sm:$0xff] }
  0x5c   : > { %v635_v27 = vmul.f32 1.442695, %v587_v16  ;;  %v637_v38 = vmul.f32 1.442695, %v588_v28  ;;  %v573_v45 = vsub.f32 0.0, %v1802_v36  ;;  %v478_v46 = vmax.f32 %v446_v37, -7.0 }
  0x5d   : > { %v603_v32 = vmul.f32 1.442695, %v571_v23  ;;  %v605_v43 = vmul.f32 1.442695, %v572_v35  ;;  %v540_v48 = vsub.f32 %v1792_v29, %v1799_v34  ;;  %v639_v49 = vmul.f32 1.442695, %v589_v41 }
  0x5e   : > { %1401 = vpow2.f32 %v635_v27  ;;  %v1822_v50 = vld [vmem:[%s1743_s9 + $0x10] sm:$0xff]  ;;  %v590_v52 = vsub.f32 0.0, %v1812_v42  ;;  %v607_v54 = vmul.f32 1.442695, %v573_v45  ;;  %v1830_v55 = vld [vmem:[%s1743_s9 + $0x98] sm:$0xff]  ;;  %v1832_v56 = vmin.f32 %v478_v46, 5.0 }
  0x5f   : > { %1403 = vpow2.f32 %v603_v32  ;;  %v495_v57 = vmax.f32 %v463_v47, -7.0  ;;  %v464_v58 = vld [vmem:[%s1749_s21 + $0xa8] sm:$0xff]  ;;  %v557_v59 = vsub.f32 %v1806_v39, %v1809_v40  ;;  %v1838_v61 = vld [vmem:[%s1736_s10 + $0x18] sm:$0xff]  ;;  %v479_v63 = vmax.f32 %v447_v53, -7.0  ;;  %v1848_v5 = vld [vmem:[%s1736_s10 + $0xa0] sm:$0xff]  ;;  %s1290_s18 = sshll.u32 %s1732_s7, 1 }
  0x60   : > { %1405 = vpow2.f32 %v637_v38  ;;  %v641_v60 = vmul.f32 1.442695, %v590_v52  ;;  %v1841_v62 = vld [vmem:[%s1743_s9 + $0x18] sm:$0xff]  ;;  %v448_v0 = vld [vmem:[%s1749_s21 + $0x28] sm:$0xff]  ;;  %v541_v1 = vsub.f32 %v1815_v44, %v1822_v50  ;;  %v574_v2 = vsub.f32 0.0, %v1832_v56  ;;  %v1851_v6 = vld [vmem:[%s1743_s9 + $0xa0] sm:$0xff] }
  0x61   : > { %1407 = vpow2.f32 %v605_v43  ;;  %v1853_v10 = vmin.f32 %v495_v57, 5.0  ;;  %v465_v11 = vld [vmem:[%s1749_s21 + $0xb0] sm:$0xff]  ;;  %v558_v13 = vsub.f32 %v1825_v51, %v1830_v55  ;;  %v1858_v14 = vmin.f32 %v479_v63, 5.0  ;;  %v1865_v26 = vld [vmem:[%s1736_s10 + $0x20] sm:$0xff]  ;;  %v466_v29 = vld [vmem:[%s1749_s21 + $0xb8] sm:$0xff]  ;;  %s1292_s24 = sshll.u32 %s1543_s15, 5 }
  0x62   : > { %1409 = vpow2.f32 %v639_v49  ;;  %v496_v16 = vmax.f32 %v464_v58, -7.0  ;;  %v449_v20 = vld [vmem:[%s1749_s21 + $0x30] sm:$0xff]  ;;  %v542_v21 = vsub.f32 %v1838_v61, %v1841_v62  ;;  %v609_v23 = vmul.f32 1.442695, %v574_v2  ;;  %v1868_v27 = vld [vmem:[%s1743_s9 + $0x20] sm:$0xff]  ;;  %s372_s1 = scalar_lea.vmem [#allocation8], %s1290_s18  ;;  %s2287_s30 = scalar_lea.hbm %s2339_s3, %s1292_s24 }
  0x63   : > { %1411 = vpow2.f32 %v607_v54  ;;  %v591_v25 = vsub.f32 0.0, %v1853_v10  ;;  %v480_v28 = vmax.f32 %v448_v0, -7.0  ;;  %v559_v31 = vsub.f32 %v1848_v5, %v1851_v6  ;;  %s1133_s23 = sshll.u32 %s372_s1, 4  ;;  %s1118_s15 = scalar_lea.sflag [#allocation4], %s1732_s7  ;;  %s2289_s23 = int_to_ptr.vmem [resolvable:$true] %s1133_s23 }
  0x64   : > { %1413 = vpow2.f32 %v641_v60  ;;  %v575_v32 = vsub.f32 0.0, %v1858_v14  ;;  %v1873_v35 = vmin.f32 %v496_v16, 5.0  ;;  %v497_v37 = vmax.f32 %v465_v11, -7.0  ;;  %s1465_s29 = scalar_lea.vmem %s2289_s23, 32  ;;  %s1573_s6 = smov [#allocation8]  }
  0x65   : > { %1415 = vpow2.f32 %v609_v23  ;;  %v643_v38 = vmul.f32 1.442695, %v591_v25  ;;  %v1875_v39 = vmin.f32 %v480_v28, 5.0  ;;  %v481_v40 = vmax.f32 %v449_v20, -7.0  ;;  %v400_v25 = vld [vmem:[%s1736_s10 + $0xa8] sm:$0xff]  ;;  %p1466_p2 = scmp.ne.s32.totalorder %s2289_s23, %s1465_s29  ;;  %s1469_s4 = sshll.u32 %s1573_s6, 4  ;;  %s1470_s4 = int_to_ptr.vmem [resolvable:$false] %s1469_s4 }
  0x66   : > { %v543_v43 = vsub.f32 %v1865_v26, %v1868_v27  ;;  %v611_v44 = vmul.f32 1.442695, %v575_v32  ;;  %v592_v45 = vsub.f32 0.0, %v1873_v35  ;;  %v1880_v46 = vmin.f32 %v497_v37, 5.0  ;;  %v432_v28 = vld [vmem:[%s1743_s9 + $0xa8] sm:$0xff]  ;;  %v1934_v26 = vld [vmem:[%s1743_s9 + $0xb8] sm:$0xff]  ;;  %p1472_p5 = scmp.lt.s32.totalorder %s2289_s23, %s1470_s4 }
  0x67   : > { %1417 = vpow2.f32 %v643_v38  ;;  %v576_v50 = vsub.f32 0.0, %v1875_v39  ;;  %v1886_v51 = vmin.f32 %v481_v40, 5.0  ;;  %v384_v32 = vld [vmem:[%s1736_s10 + $0x28] sm:$0xff]  ;;  %vm969_vm5 = vcmask 458112   ;;  %p1467_p3 = pnand %p1466_p2, %p1649_p9  ;;  %s1471_s5 = scalar_lea.vmem %s1470_s4, 64 }
  0x68   : > { %v1402_v41 = vpop.eup %1401  ;;  %1419 = vpow2.f32 %v611_v44  ;;  %v645_v54 = vmul.f32 1.442695, %v592_v45  ;;  %v593_v55 = vsub.f32 0.0, %v1880_v46  ;;  %v416_v40 = vld [vmem:[%s1743_s9 + $0x28] sm:$0xff]  ;;  %v433_v44 = vld [vmem:[%s1743_s9 + $0xb0] sm:$0xff]  ;;  %vm976_vm6 = vcmask 523712   ;;  %p1473_p6 = scmp.lt.s32.totalorder %s1471_s5, %s1465_s29 }
  0x69   : > { %v1404_v47 = vpop.eup %1403  ;;  %v683_v49 = vmul.f32 %v1402_v41, %v555_v15  ;;  %v613_v4 = vmul.f32 1.442695, %v576_v50  ;;  %v577_v15 = vsub.f32 0.0, %v1886_v51  ;;  %v401_v41 = vld [vmem:[%s1736_s10 + $0xb0] sm:$0xff]  ;;  %v450_v50 = vld [vmem:[%s1749_s21 + $0x38] sm:$0xff]  ;;  %vm983_vm7 = vcmask 589312   ;;  %p1468_p4 = pneg %p1467_p3 }
  0x6a   : > { %v1406_v52 = vpop.eup %1405  ;;  %v667_v53 = vmul.f32 %v1404_v47, %v539_v22  ;;  %1421 = vpow2.f32 %v645_v54  ;;  %v647_v9 = vmul.f32 1.442695, %v593_v55  ;;  %v560_v55 = vsub.f32 %v400_v25, %v432_v28  ;;  %p1474_p7 = por %p1473_p6, %p1472_p5 }
  0x6b   : > { %v1408_v57 = vpop.eup %1407  ;;  %v715_v58 = vmul.f32 %v683_v49, %v683_v49  ;;  %v684_v3 = vmul.f32 %v1406_v52, %v556_v33  ;;  %1423 = vpow2.f32 %v613_v4  ;;  %v615_v45 = vmul.f32 1.442695, %v577_v15 }
  0x6c   : > { %v1410_v60 = vpop.eup %1409  ;;  %v699_v63 = vmul.f32 %v667_v53, %v667_v53  ;;  %v668_v8 = vmul.f32 %v1408_v57, %v540_v48  ;;  %1425 = vpow2.f32 %v647_v9  ;;  %v544_v57 = vsub.f32 %v384_v32, %v416_v40  ;;  %p1475_p8 = pnand %p1474_p7, %p1468_p4 }
  0x6d   : > { %v1412_v22 = vpop.eup %1411  ;;  %v747_v0 = vmul.f32 0.5, %v715_v58  ;;  %v716_v2 = vmul.f32 %v684_v3, %v684_v3  ;;  %v685_v17 = vmul.f32 %v1410_v60, %v557_v59  ;;  %1427 = vpow2.f32 %v615_v45  ;;  %v467_v3 = vld [vmem:[%s1749_s21 + $0xc0] sm:$0xff] }
  0x6e   : > { %v1414_v18 = vpop.eup %1413  ;;  %v731_v33 = vmul.f32 0.5, %v699_v63  ;;  %v700_v11 = vmul.f32 %v668_v8, %v668_v8  ;;  %v669_v16 = vmul.f32 %v1412_v22, %v541_v1  ;;  %v561_v58 = vsub.f32 %v401_v41, %v433_v44  ;;  %v385_v63 = vld [vmem:[%s1736_s10 + $0x30] sm:$0xff] }
  0x6f   : > { %v779_v34 = vadd.f32 %v747_v0, %v1760_v7  ;;  %v748_v48 = vmul.f32 0.5, %v716_v2  ;;  %v717_v20 = vmul.f32 %v685_v17, %v685_v17  ;;  %v686_v23 = vmul.f32 %v1414_v18, %v558_v13  ;;  %v1416_v1 = vpop.eup %1415  ;;  %v417_v8 = vld [vmem:[%s1743_s9 + $0x30] sm:$0xff] }
  0x70   : > { %v763_v59 = vadd.f32 %v731_v33, %v1769_v12  ;;  %v732_v37 = vmul.f32 0.5, %v700_v11  ;;  %v701_v38 = vmul.f32 %v669_v16, %v669_v16  ;;  %v498_v13 = vmax.f32 %v466_v29, -7.0  ;;  %v1931_v33 = vld [vmem:[%s1736_s10 + $0xb8] sm:$0xff] }
  0x71   : > { %827 = vadd.xlane.f32.xlu1 %v779_v34  ;;  %v780_v7 = vadd.f32 %v748_v48, %v1781_v19  ;;  %v749_v47 = vmul.f32 0.5, %v717_v20  ;;  %v718_v49 = vmul.f32 %v686_v23, %v686_v23  ;;  %v670_v53 = vmul.f32 %v1416_v1, %v542_v21  ;;  %v1418_v54 = vpop.eup %1417  ;;  %v1939_v34 = vld [vmem:[%s1736_s10 + $0x38] sm:$0xff]  ;;  %v451_v23 = vld [vmem:[%s1749_s21 + $0x40] sm:$0xff] }
  0x72   : > { %795 = vadd.xlane.f32.xlu0 %v763_v59  ;;  %v764_v12 = vadd.f32 %v732_v37, %v1787_v24  ;;  %v733_v52 = vmul.f32 0.5, %v701_v38  ;;  %v1914_v19 = vmin.f32 %v498_v13, 5.0  ;;  %v1420_v4 = vpop.eup %1419  ;;  %v687_v24 = vmul.f32 %v1418_v54, %v559_v31  ;;  %v1942_v48 = vld [vmem:[%s1743_s9 + $0x38] sm:$0xff]  ;;  %v1947_v59 = vld [vmem:[%s1736_s10 + $0xc0] sm:$0xff] }
  0x73   : > { %v750_v15 = vmul.f32 0.5, %v718_v49  ;;  %v702_v60 = vmul.f32 %v670_v53, %v670_v53  ;;  %v482_v9 = vmax.f32 %v450_v50, -7.0  ;;  %v781_v61 = vadd.f32 %v749_v47, %v1794_v30  ;;  %v1959_v1 = vld [vmem:[%s1736_s10 + $0x40] sm:$0xff]  ;;  %v468_v49 = vld [vmem:[%s1749_s21 + $0xc8] sm:$0xff] }
  0x74   : > { %v765_v62 = vadd.f32 %v733_v52, %v1802_v36  ;;  %v671_v21 = vmul.f32 %v1420_v4, %v543_v43  ;;  %v594_v22 = vsub.f32 0.0, %v1914_v19  ;;  %v1422_v0 = vpop.eup %1421  ;;  %v719_v6 = vmul.f32 %v687_v24, %v687_v24  ;;  %v452_v53 = vld [vmem:[%s1749_s21 + $0x48] sm:$0xff] }
  0x75   : > { %829 = vadd.xlane.f32.xlu1 %v780_v7  ;;  %v734_v5 = vmul.f32 0.5, %v702_v60  ;;  %v1928_v31 = vmin.f32 %v482_v9, 5.0  ;;  %v499_v2 = vmax.f32 %v467_v3, -7.0  ;;  %v1424_v17 = vpop.eup %1423  ;;  %v688_v18 = vmul.f32 %v1422_v0, %v560_v55  ;;  %v1962_v7 = vld [vmem:[%s1743_s9 + $0x40] sm:$0xff]  ;;  %v469_v3 = vld [vmem:[%s1749_s21 + $0xd0] sm:$0xff] }
  0x76   : > { %797 = vadd.xlane.f32.xlu0 %v764_v12  ;;  %v703_v30 = vmul.f32 %v671_v21, %v671_v21  ;;  %v545_v36 = vsub.f32 %v385_v63, %v417_v8  ;;  %v649_v27 = vmul.f32 1.442695, %v594_v22  ;;  %v1426_v43 = vpop.eup %1425  ;;  %v782_v11 = vadd.f32 %v750_v15, %v1812_v42  ;;  %v1950_v42 = vld [vmem:[%s1743_s9 + $0xc0] sm:$0xff]  ;;  %v453_v21 = vld [vmem:[%s1749_s21 + $0x50] sm:$0xff] }
  0x77   : > { %v766_v16 = vadd.f32 %v734_v5, %v1832_v56  ;;  %v672_v29 = vmul.f32 %v1424_v17, %v544_v57  ;;  %v578_v20 = vsub.f32 0.0, %v1928_v31  ;;  %v751_v25 = vmul.f32 0.5, %v719_v6  ;;  %v1428_v13 = vpop.eup %1427  ;;  %v470_v5 = vld [vmem:[%s1749_s21 + $0xd8] sm:$0xff] }
  0x78   : > { %v720_v28 = vmul.f32 %v688_v18, %v688_v18  ;;  %v689_v32 = vmul.f32 %v1426_v43, %v561_v58  ;;  %1429 = vpow2.f32 %v649_v27  ;;  %v735_v56 = vmul.f32 0.5, %v703_v30 }
  0x79   : > { %831 = vadd.xlane.f32.xlu1 %v781_v61  ;;  %v704_v37 = vmul.f32 %v672_v29, %v672_v29  ;;  %v617_v38 = vmul.f32 1.442695, %v578_v20  ;;  %v1952_v40 = vmin.f32 %v499_v2, 5.0  ;;  %v562_v44 = vsub.f32 %v1931_v33, %v1934_v26  ;;  %v1981_v61 = vld [vmem:[%s1743_s9 + $0xc8] sm:$0xff]  ;;  %v454_v26 = vld [vmem:[%s1749_s21 + $0x58] sm:$0xff] }
  0x7a   : > { %799 = vadd.xlane.f32.xlu0 %v765_v62  ;;  %v721_v41 = vmul.f32 %v689_v32, %v689_v32  ;;  %v546_v45 = vsub.f32 %v1939_v34, %v1942_v48  ;;  %v483_v47 = vmax.f32 %v451_v23, -7.0  ;;  %v752_v50 = vmul.f32 0.5, %v720_v28  ;;  %v2004_v28 = vld [vmem:[%s1736_s10 + $0x48] sm:$0xff]  ;;  %v2029_v34 = vld [vmem:[%s1736_s10 + $0x50] sm:$0xff] }
  0x7b   : > { %1431 = vpow2.f32 %v617_v38  ;;  %v563_v12 = vsub.f32 %v1947_v59, %v1950_v42  ;;  %v595_v52 = vsub.f32 0.0, %v1952_v40  ;;  %v783_v54 = vadd.f32 %v751_v25, %v1853_v10  ;;  %v1978_v10 = vld [vmem:[%s1736_s10 + $0xc8] sm:$0xff] }
  0x7c   : > { %v736_v55 = vmul.f32 0.5, %v704_v37  ;;  %v673_v57 = vmul.f32 %v1428_v13, %v545_v36  ;;  %v1970_v58 = vmin.f32 %v483_v47, 5.0  ;;  %v767_v4 = vadd.f32 %v735_v56, %v1858_v14  ;;  %v2007_v32 = vld [vmem:[%s1743_s9 + $0x48] sm:$0xff]  ;;  %v2017_v13 = vld [vmem:[%s1736_s10 + $0xd0] sm:$0xff] }
  0x7d   : > { %833 = vadd.xlane.f32.xlu1 %v782_v11  ;;  %v651_v15 = vmul.f32 1.442695, %v595_v52  ;;  %v547_v60 = vsub.f32 %v1959_v1, %v1962_v7  ;;  %v500_v24 = vmax.f32 %v468_v49, -7.0  ;;  %v753_v63 = vmul.f32 0.5, %v721_v41 }
  0x7e   : > { %801 = vadd.xlane.f32.xlu0 %v766_v16  ;;  %v705_v8 = vmul.f32 %v673_v57, %v673_v57  ;;  %v579_v9 = vsub.f32 0.0, %v1970_v58  ;;  %v484_v62 = vmax.f32 %v452_v53, -7.0  ;;  %v784_v22 = vadd.f32 %v752_v50, %v1873_v35  ;;  %v2020_v50 = vld [vmem:[%s1743_s9 + $0xd0] sm:$0xff] }
  0x7f   : > { %1433 = vpow2.f32 %v651_v15  ;;  %v1985_v14 = vmin.f32 %v500_v24, 5.0  ;;  %v501_v0 = vmax.f32 %v469_v3, -7.0  ;;  %v768_v6 = vadd.f32 %v736_v55, %v1875_v39  ;;  %v2032_v3 = vld [vmem:[%s1743_s9 + $0x50] sm:$0xff] }
  0x80   : > { %v737_v2 = vmul.f32 0.5, %v705_v8  ;;  %v619_v17 = vmul.f32 1.442695, %v579_v9  ;;  %v1989_v30 = vmin.f32 %v484_v62, 5.0  ;;  %v564_v18 = vsub.f32 %v1978_v10, %v1981_v61  ;;  %v457_v61 = vld [vmem:[%s1749_s21 + $0x70] sm:$0xff] }
  0x81   : > { %835 = vadd.xlane.f32.xlu1 %v783_v54  ;;  %v596_v36 = vsub.f32 0.0, %v1985_v14  ;;  %v1994_v35 = vmin.f32 %v501_v0, 5.0  ;;  %v485_v33 = vmax.f32 %v453_v21, -7.0  ;;  %v785_v43 = vadd.f32 %v753_v63, %v1880_v46  ;;  %v455_v54 = vld [vmem:[%s1749_s21 + $0x60] sm:$0xff]  ;;  %v472_v63 = vld [vmem:[%s1749_s21 + $0xe8] sm:$0xff]  ;;  %v2040_v21 = vld [vmem:[%s1736_s10 + $0xd8] sm:$0xff] }
  0x82   : > { %803 = vadd.xlane.f32.xlu0 %v767_v4  ;;  %v1430_v27 = vpop.eup %1429  ;;  %1435 = vpow2.f32 %v619_v17  ;;  %v580_v39 = vsub.f32 0.0, %v1989_v30  ;;  %v502_v11 = vmax.f32 %v470_v5, -7.0  ;;  %v769_v25 = vadd.f32 %v737_v2, %v1886_v51  ;;  %v471_v51 = vld [vmem:[%s1749_s21 + $0xe0] sm:$0xff]  ;;  %v2049_v2 = vld [vmem:[%s1736_s10 + $0x58] sm:$0xff] }
  0x83   : > { %v690_v16 = vmul.f32 %v1430_v27, %v562_v44  ;;  %v653_v29 = vmul.f32 1.442695, %v596_v36  ;;  %v597_v20 = vsub.f32 0.0, %v1994_v35  ;;  %v2000_v23 = vmin.f32 %v485_v33, 5.0  ;;  %v2054_v36 = vld [vmem:[%s1743_s9 + $0x58] sm:$0xff] }
  0x84   : > { %v621_v46 = vmul.f32 1.442695, %v580_v39  ;;  %v2009_v56 = vmin.f32 %v502_v11, 5.0  ;;  %v486_v37 = vmax.f32 %v454_v26, -7.0  ;;  %v548_v57 = vsub.f32 %v2004_v28, %v2007_v32  ;;  %v473_v39 = vld [vmem:[%s1749_s21 + $0xf0] sm:$0xff] }
  0x85   : > { %837 = vadd.xlane.f32.xlu1 %v784_v22  ;;  %v1432_v38 = vpop.eup %1431  ;;  %v722_v41 = vmul.f32 %v690_v16, %v690_v16  ;;  %1437 = vpow2.f32 %v653_v29  ;;  %v655_v44 = vmul.f32 1.442695, %v597_v20  ;;  %v581_v47 = vsub.f32 0.0, %v2000_v23  ;;  %v2043_v22 = vld [vmem:[%s1743_s9 + $0xd8] sm:$0xff] }
  0x86   : > { %805 = vadd.xlane.f32.xlu0 %v768_v6  ;;  %v674_v49 = vmul.f32 %v1432_v38, %v546_v45  ;;  %1439 = vpow2.f32 %v621_v46  ;;  %v598_v52 = vsub.f32 0.0, %v2009_v56  ;;  %v2023_v53 = vmin.f32 %v486_v37, 5.0 }
  0x87   : > { %v754_v55 = vmul.f32 0.5, %v722_v41  ;;  %1441 = vpow2.f32 %v655_v44  ;;  %v623_v48 = vmul.f32 1.442695, %v581_v47  ;;  %v503_v24 = vmax.f32 %v471_v51, -7.0  ;;  %v2080_v51 = vld [vmem:[%s1736_s10 + $0xe0] sm:$0xff] }
  0x88   : > { %v706_v45 = vmul.f32 %v674_v49, %v674_v49  ;;  %v657_v4 = vmul.f32 1.442695, %v598_v52  ;;  %v582_v15 = vsub.f32 0.0, %v2023_v53  ;;  %v565_v62 = vsub.f32 %v2017_v13, %v2020_v50  ;;  %v2083_v49 = vld [vmem:[%s1743_s9 + $0xe0] sm:$0xff] }
  0x89   : > { %839 = vadd.xlane.f32.xlu1 %v785_v43  ;;  %v1434_v8 = vpop.eup %1433  ;;  %v786_v9 = vadd.f32 %v754_v55, %v1914_v19  ;;  %1443 = vpow2.f32 %v623_v48  ;;  %v487_v0 = vmax.f32 %v455_v54, -7.0  ;;  %v549_v17 = vsub.f32 %v2029_v34, %v2032_v3  ;;  %v456_v43 = vld [vmem:[%s1749_s21 + $0x68] sm:$0xff] }
  0x8a   : > { %807 = vadd.xlane.f32.xlu0 %v769_v25  ;;  %v738_v5 = vmul.f32 0.5, %v706_v45  ;;  %v691_v6 = vmul.f32 %v1434_v8, %v563_v12  ;;  %1445 = vpow2.f32 %v657_v4  ;;  %v625_v19 = vmul.f32 1.442695, %v582_v15 }
  0x8b   : > { %v2056_v33 = vmin.f32 %v503_v24, 5.0  ;;  %v2058_v26 = vmin.f32 %v487_v0, 5.0  ;;  %v504_v27 = vmax.f32 %v472_v63, -7.0  ;;  %v566_v12 = vsub.f32 %v2040_v21, %v2043_v22  ;;  %v391_v21 = vld [vmem:[%s1736_s10 + $0x60] sm:$0xff] }
  0x8c   : > { %v1436_v11 = vpop.eup %1435  ;;  %v770_v59 = vadd.f32 %v738_v5, %v1928_v31  ;;  %v723_v42 = vmul.f32 %v691_v6, %v691_v6  ;;  %1447 = vpow2.f32 %v625_v19  ;;  %v550_v31 = vsub.f32 %v2049_v2, %v2054_v36  ;;  %v423_v22 = vld [vmem:[%s1743_s9 + $0x60] sm:$0xff]  ;;  %v474_v36 = vld [vmem:[%s1749_s21 + $0xf8] sm:$0xff] }
  0x8d   : > { %841 = vadd.xlane.f32.xlu1 %v786_v9  ;;  %v675_v16 = vmul.f32 %v1436_v11, %v547_v60  ;;  %v599_v29 = vsub.f32 0.0, %v2056_v33  ;;  %v583_v20 = vsub.f32 0.0, %v2058_v26  ;;  %v2070_v25 = vmin.f32 %v504_v27, 5.0  ;;  %v440_v11 = vld [vmem:[%s1743_s9 + $0xe8] sm:$0xff] }
  0x8e   : > { %809 = vadd.xlane.f32.xlu0 %v770_v59  ;;  %v755_v28 = vmul.f32 0.5, %v723_v42  ;;  %v488_v32 = vmax.f32 %v456_v43, -7.0  ;;  %v505_v46 = vmax.f32 %v473_v39, -7.0  ;;  %v567_v4 = vsub.f32 %v2080_v51, %v2083_v49  ;;  %v408_v39 = vld [vmem:[%s1736_s10 + $0xe8] sm:$0xff]  ;;  %v458_v42 = vld [vmem:[%s1749_s21 + $0x78] sm:$0xff] }
  0x8f   : > { %v1438_v37 = vpop.eup %1437  ;;  %v707_v38 = vmul.f32 %v675_v16, %v675_v16  ;;  %v659_v41 = vmul.f32 1.442695, %v599_v29  ;;  %v627_v1 = vmul.f32 1.442695, %v583_v20  ;;  %v600_v7 = vsub.f32 0.0, %v2070_v25 }
  0x90   : > { %v1440_v60 = vpop.eup %1439  ;;  %v787_v44 = vadd.f32 %v755_v28, %v1952_v40  ;;  %v692_v47 = vmul.f32 %v1438_v37, %v564_v18  ;;  %v2085_v13 = vmin.f32 %v488_v32, 5.0  ;;  %v2087_v50 = vmin.f32 %v505_v46, 5.0  ;;  %v392_v46 = vld [vmem:[%s1736_s10 + $0x68] sm:$0xff] }
  0x91   : > { %v1442_v52 = vpop.eup %1441  ;;  %v739_v54 = vmul.f32 0.5, %v707_v38  ;;  %v676_v55 = vmul.f32 %v1440_v60, %v548_v57  ;;  %1449 = vpow2.f32 %v659_v41  ;;  %v661_v34 = vmul.f32 1.442695, %v600_v7  ;;  %v424_v37 = vld [vmem:[%s1743_s9 + $0x68] sm:$0xff] }
  0x92   : > { %843 = vadd.xlane.f32.xlu1 %v787_v44  ;;  %v724_v40 = vmul.f32 %v692_v47, %v692_v47  ;;  %v693_v48 = vmul.f32 %v1442_v52, %v565_v62  ;;  %1451 = vpow2.f32 %v627_v1  ;;  %v584_v10 = vsub.f32 0.0, %v2085_v13 }
  0x93   : > { %v1444_v18 = vpop.eup %1443  ;;  %v771_v45 = vadd.f32 %v739_v54, %v1970_v58  ;;  %v708_v3 = vmul.f32 %v676_v55, %v676_v55  ;;  %1453 = vpow2.f32 %v661_v34  ;;  %v601_v58 = vsub.f32 0.0, %v2087_v50  ;;  %v409_v34 = vld [vmem:[%s1736_s10 + $0xf0] sm:$0xff] }
  0x94   : > { %v1446_v57 = vpop.eup %1445  ;;  %v756_v15 = vmul.f32 0.5, %v724_v40  ;;  %v725_v24 = vmul.f32 %v693_v48, %v693_v48  ;;  %v677_v63 = vmul.f32 %v1444_v18, %v549_v17  ;;  %v629_v8 = vmul.f32 1.442695, %v584_v10  ;;  %v441_v40 = vld [vmem:[%s1743_s9 + $0xf0] sm:$0xff] }
  0x95   : > { %811 = vadd.xlane.f32.xlu0 %v771_v45  ;;  %v740_v9 = vmul.f32 0.5, %v708_v3  ;;  %v694_v62 = vmul.f32 %v1446_v57, %v566_v12  ;;  %v489_v0 = vmax.f32 %v457_v61, -7.0  ;;  %v663_v59 = vmul.f32 1.442695, %v601_v58 }
  0x96   : > { %v1448_v5 = vpop.eup %1447  ;;  %v788_v6 = vadd.f32 %v756_v15, %v1985_v14  ;;  %v757_v2 = vmul.f32 0.5, %v725_v24  ;;  %v709_v19 = vmul.f32 %v677_v63, %v677_v63  ;;  %1455 = vpow2.f32 %v629_v8 }
  0x97   : > { %v772_v17 = vadd.f32 %v740_v9, %v1989_v30  ;;  %v726_v27 = vmul.f32 %v694_v62, %v694_v62  ;;  %v678_v43 = vmul.f32 %v1448_v5, %v550_v31  ;;  %v551_v29 = vsub.f32 %v391_v21, %v423_v22  ;;  %v393_v62 = vld [vmem:[%s1736_s10 + $0x70] sm:$0xff] }
  0x98   : > { %845 = vadd.xlane.f32.xlu1 %v788_v6  ;;  %v789_v12 = vadd.f32 %v757_v2, %v1994_v35  ;;  %v741_v16 = vmul.f32 0.5, %v709_v19  ;;  %v2104_v14 = vmin.f32 %v489_v0, 5.0  ;;  %1457 = vpow2.f32 %v663_v59  ;;  %v425_v21 = vld [vmem:[%s1743_s9 + $0x70] sm:$0xff] }
  0x99   : > { %813 = vadd.xlane.f32.xlu0 %v772_v17  ;;  %v758_v20 = vmul.f32 0.5, %v726_v27  ;;  %v710_v28 = vmul.f32 %v678_v43, %v678_v43  ;;  %v506_v30 = vmax.f32 %v474_v36, -7.0  ;;  %v568_v32 = vsub.f32 %v408_v39, %v440_v11  ;;  %v410_v36 = vld [vmem:[%s1736_s10 + $0xf8] sm:$0xff] }
  0x9a   : > { %v773_v31 = vadd.f32 %v741_v16, %v2000_v23  ;;  %v585_v38 = vsub.f32 0.0, %v2104_v14  ;;  %v490_v41 = vmax.f32 %v458_v42, -7.0  ;;  %v552_v55 = vsub.f32 %v392_v46, %v424_v37  ;;  %v442_v17 = vld [vmem:[%s1743_s9 + $0xf8] sm:$0xff] }
  0x9b   : > { %v1450_v35 = vpop.eup %1449  ;;  %v742_v1 = vmul.f32 0.5, %v710_v28  ;;  %v2110_v7 = vmin.f32 %v506_v30, 5.0  ;;  %v790_v44 = vadd.f32 %v758_v20, %v2009_v56  ;;  %v553_v19 = vsub.f32 %v393_v62, %v425_v21  ;;  %v394_v27 = vld [vmem:[%s1736_s10 + $0x78] sm:$0xff] }
  0x9c   : > { %v1452_v60 = vpop.eup %1451  ;;  %847 = vadd.xlane.f32.xlu1 %v789_v12  ;;  %v695_v47 = vmul.f32 %v1450_v35, %v567_v4  ;;  %v631_v51 = vmul.f32 1.442695, %v585_v38  ;;  %v2113_v49 = vmin.f32 %v490_v41, 5.0  ;;  %v426_v43 = vld [vmem:[%s1743_s9 + $0x78] sm:$0xff]  ;;  %v570_v42 = vsub.f32 %v410_v36, %v442_v17 }
  0x9d   : > { %v1454_v23 = vpop.eup %1453  ;;  %815 = vadd.xlane.f32.xlu0 %v773_v31  ;;  %v774_v52 = vadd.f32 %v742_v1, %v2023_v53  ;;  %v679_v54 = vmul.f32 %v1452_v60, %v551_v29  ;;  %v602_v48 = vsub.f32 0.0, %v2110_v7  ;;  %v569_v53 = vsub.f32 %v409_v34, %v441_v40 }
  0x9e   : > { %v727_v10 = vmul.f32 %v695_v47, %v695_v47  ;;  %v696_v61 = vmul.f32 %v1454_v23, %v568_v32  ;;  %1459 = vpow2.f32 %v631_v51  ;;  %v586_v56 = vsub.f32 0.0, %v2113_v49 }
  0x9f   : > { %v711_v18 = vmul.f32 %v679_v54, %v679_v54  ;;  %v665_v45 = vmul.f32 1.442695, %v602_v48  ;;  %v554_v12 = vsub.f32 %v394_v27, %v426_v43  ;;  %vm990_vm8 = vcmask 654912  }
  0xa0   : > { %v1456_v3 = vpop.eup %1455  ;;  %849 = vadd.xlane.f32.xlu1 %v790_v44  ;;  %v759_v4 = vmul.f32 0.5, %v727_v10  ;;  %v728_v57 = vmul.f32 %v696_v61, %v696_v61  ;;  %v633_v15 = vmul.f32 1.442695, %v586_v56  ;;  %v923_v10 = vlaneseq }
  0xa1   : > { %817 = vadd.xlane.f32.xlu0 %v774_v52  ;;  %v743_v24 = vmul.f32 0.5, %v711_v18  ;;  %v680_v63 = vmul.f32 %v1456_v3, %v552_v55  ;;  %1461 = vpow2.f32 %v665_v45  ;;  %vm997_vm9 = vcmask 720512  }
  0xa2   : > { %v791_v8 = vadd.f32 %v759_v4, %v2056_v33  ;;  %v760_v9 = vmul.f32 0.5, %v728_v57  ;;  %1463 = vpow2.f32 %v633_v15  ;;  %v1458_v22 = vpop.eup %1457  ;;  %v924_v18 = vand.u32 127, %v923_v10 }
  0xa3   : > { %v775_v58 = vadd.f32 %v743_v24, %v2058_v26  ;;  %v712_v0 = vmul.f32 %v680_v63, %v680_v63  ;;  %v697_v6 = vmul.f32 %v1458_v22, %v569_v53  ;;  %v2150_v45 = vshrl.u32 %v923_v10, 7 }
  0xa4   : > { %851 = vadd.xlane.f32.xlu1 %v791_v8  ;;  %v792_v5 = vadd.f32 %v760_v9, %v2070_v25  ;;  %v929_v3 = vadd.s32 4294967288, %v924_v18  ;;  %v936_v57 = vadd.s32 4294967280, %v924_v18  ;;  %v943_v53 = vadd.s32 4294967272, %v924_v18 }
  0xa5   : > { %819 = vadd.xlane.f32.xlu0 %v775_v58  ;;  %v744_v2 = vmul.f32 0.5, %v712_v0  ;;  %v729_v33 = vmul.f32 %v697_v6, %v697_v6  ;;  %v950_v15 = vadd.s32 4294967264, %v924_v18  ;;  %v957_v63 = vadd.s32 4294967256, %v924_v18 }
  0xa6   : > { %v964_v8 = vadd.s32 4294967248, %v924_v18  ;;  %v971_v9 = vadd.s32 4294967240, %v924_v18  ;;  %v978_v62 = vadd.s32 4294967232, %v924_v18  ;;  %v985_v21 = vadd.s32 4294967224, %v924_v18 }
  0xa7   : > { %v776_v39 = vadd.f32 %v744_v2, %v2085_v13  ;;  %v761_v59 = vmul.f32 0.5, %v729_v33  ;;  %v992_v22 = vadd.s32 4294967216, %v924_v18  ;;  %v2157_v58 = vsub.s32 %v924_v18, %v2150_v45 }
  0xa8   : > { %v1460_v11 = vpop.eup %1459  ;;  %853 = vadd.xlane.f32.xlu1 %v792_v5  ;;  %v932_v0 = vsub.s32 %v929_v3, %v2150_v45  ;;  %v999_v6 = vadd.s32 4294967208, %v924_v18  ;;  %v2163_v2 = vsub.s32 %v936_v57, %v2150_v45  ;;  %v2169_v36 = vsub.s32 %v950_v15, %v2150_v45 }
  0xa9   : > { %821 = vadd.xlane.f32.xlu0 %v776_v39  ;;  %v681_v26 = vmul.f32 %v1460_v11, %v553_v19  ;;  %v793_v25 = vadd.f32 %v761_v59, %v2087_v50  ;;  %v2166_v19 = vsub.s32 %v943_v53, %v2150_v45  ;;  %v1006_v33 = vadd.s32 4294967200, %v924_v18 }
  0xaa   : > { %v2174_v27 = vsub.s32 %v957_v63, %v2150_v45  ;;  %v2177_v43 = vsub.s32 %v964_v8, %v2150_v45  ;;  %v2180_v39 = vsub.s32 %v971_v9, %v2150_v45  ;;  %v1013_v11 = vadd.s32 4294967192, %v924_v18 }
  0xab   : > { %v1462_v16 = vpop.eup %1461  ;;  %v713_v29 = vmul.f32 %v681_v26, %v681_v26  ;;  %v2186_v26 = vsub.s32 %v985_v21, %v2150_v45  ;;  %v1027_v10 = vadd.s32 4294967176, %v924_v18  ;;  %vm1004_vm10 = vcmask 786112  }
  0xac   : > { %v1464_v20 = vpop.eup %1463  ;;  %855 = vadd.xlane.f32.xlu1 %v793_v25  ;;  %v698_v28 = vmul.f32 %v1462_v16, %v570_v42  ;;  %v2183_v42 = vsub.s32 %v978_v62, %v2150_v45  ;;  %vm1011_vm11 = vcmask 851712   ;;  %vm1018_vm12 = vcmask 917312  }
  0xad   : > { %v745_v30 = vmul.f32 0.5, %v713_v29  ;;  %v682_v31 = vmul.f32 %v1464_v20, %v554_v12  ;;  %v2189_v12 = vsub.s32 %v992_v22, %v2150_v45  ;;  %v2192_v29 = vsub.s32 %v999_v6, %v2150_v45 }
  0xae   : > { %v730_v32 = vmul.f32 %v698_v28, %v698_v28  ;;  %v1020_v28 = vadd.s32 4294967184, %v924_v18  ;;  %v2222_v9 = vsub.s32 %v1027_v10, %v2150_v45  ;;  %vm1025_vm13 = vcmask 982912  }
  0xaf   : > { %v777_v46 = vadd.f32 %v745_v30, %v2104_v14  ;;  %v714_v13 = vmul.f32 %v682_v31, %v682_v31  ;;  %vm1032_vm14 = vcmask 1048512   ;;  %vm1113_vm15 = vcmask 1041409  }
  0xb0   : > { %v762_v37 = vmul.f32 0.5, %v730_v32  ;;  %v2212_v15 = vsub.s32 %v1020_v28, %v2150_v45 }
  0xb1   : > { %823 = vadd.xlane.f32.xlu0 %v777_v46  ;;  %v746_v38 = vmul.f32 0.5, %v714_v13  ;;  %v2199_v13 = vsub.s32 %v1006_v33, %v2150_v45 }
  0xb2   : > { %v794_v41 = vadd.f32 %v762_v37, %v2110_v7 }
  0xb3   : > { %v778_v35 = vadd.f32 %v746_v38, %v2113_v49 }
  0xb4   : > { %857 = vadd.xlane.f32.xlu1 %v794_v41 }
  0xb5   : > { %825 = vadd.xlane.f32.xlu0 %v778_v35  ;;  %v2203_v35 = vsub.s32 %v1013_v11, %v2150_v45 }
  0xfe   : > { %v828_v50 = vpop.xlane.xlu1 %827 }
  0xff   : > { %v2134_v1 = vpop.xlane.xlu0 %795  ;;  %v875_v30 = vadd.f32 117.62413, %v828_v50 }
 0x100   : > { %v859_v37 = vadd.f32 117.62413, %v2134_v1 }
 0x101   : > { %v1037_v53 = vrot.slane %v875_v30, %v2157_v58 }
 0x102   : > { %v830_v60 = vpop.xlane.xlu1 %829 }
 0x103   : > { %v798_v44 = vpop.xlane.xlu0 %797  ;;  %v876_v59 = vadd.f32 117.62413, %v830_v60 }
 0x104   : > { %v860_v25 = vadd.f32 117.62413, %v798_v44 }
 0x105   : > { %v1041_v60 = vrot.slane %v876_v59, %v932_v0 }
 0x106   : > { %v832_v47 = vpop.xlane.xlu1 %831  ;;  %v933_v50 = vrot.slane %v860_v25, %v932_v0 }
 0x107   : > { %v800_v51 = vpop.xlane.xlu0 %799  ;;  %v877_v16 = vadd.f32 117.62413, %v832_v47 }
 0x108   : > { %v861_v31 = vadd.f32 117.62413, %v800_v51 }
 0x109   : > { %v1046_v51 = vrot.slane %v877_v16, %v2163_v2 }
 0x10a   : > { %v834_v23 = vpop.xlane.xlu1 %833  ;;  %v940_v1 = vrot.slane %v861_v31, %v2163_v2 }
 0x10b   : > { %v802_v52 = vpop.xlane.xlu0 %801  ;;  %v878_v32 = vadd.f32 117.62413, %v834_v23 }
 0x10c   : > { %v862_v38 = vadd.f32 117.62413, %v802_v52 }
 0x10d   : > { %v1051_v52 = vrot.slane %v878_v32, %v2166_v19 }
 0x10e   : > { %v836_v14 = vpop.xlane.xlu1 %835 }
 0x10f   : > { %v804_v54 = vpop.xlane.xlu0 %803  ;;  %v879_v41 = vadd.f32 117.62413, %v836_v14 }
 0x110   : > { %v863_v44 = vadd.f32 117.62413, %v804_v54  ;;  %v928_v54 = vrot.slane %v859_v37, %v2157_v58 }
 0x111   : > { %v1056_v18 = vrot.slane %v879_v41, %v2169_v36 }
 0x112   : > { %v838_v55 = vpop.xlane.xlu1 %837  ;;  %v954_v63 = vrot.slane %v863_v44, %v2169_v36  ;;  %v935_v62 = vsel %vm934_vm0, %v933_v50, %v928_v54 }
 0x113   : > { %v2136_v34 = vpop.xlane.xlu0 %805  ;;  %v880_v47 = vadd.f32 117.62413, %v838_v55  ;;  %v947_v55 = vrot.slane %v862_v38, %v2166_v19  ;;  %v942_v0 = vsel %vm941_vm1, %v940_v1, %v935_v62 }
 0x114   : > { %v864_v23 = vadd.f32 117.62413, %v2136_v34 }
 0x115   : > { %v1061_v8 = vrot.slane %v880_v47, %v2174_v27  ;;  %v949_v45 = vsel %vm948_vm2, %v947_v55, %v942_v0 }
 0x116   : > { %v2138_v40 = vpop.xlane.xlu1 %839  ;;  %v961_v22 = vrot.slane %v864_v23, %v2174_v27  ;;  %v956_v11 = vsel %vm955_vm3, %v954_v63, %v949_v45 }
 0x117   : > { %v2140_v7 = vpop.xlane.xlu0 %807  ;;  %v881_v3 = vadd.f32 117.62413, %v2138_v40  ;;  %v1042_v40 = vsel %vm934_vm0, %v1041_v60, %v1037_v53 }
 0x118   : > { %v865_v34 = vadd.f32 117.62413, %v2140_v7  ;;  %v1047_v21 = vsel %vm941_vm1, %v1046_v51, %v1042_v40  ;;  %v963_v16 = vsel %vm962_vm4, %v961_v22, %v956_v11 }
 0x119   : > { %v1066_v58 = vrot.slane %v881_v3, %v2177_v43  ;;  %v1052_v6 = vsel %vm948_vm2, %v1051_v52, %v1047_v21 }
 0x11a   : > { %v2142_v49 = vpop.xlane.xlu1 %841  ;;  %v1057_v36 = vsel %vm955_vm3, %v1056_v18, %v1052_v6  ;;  %v968_v33 = vrot.slane %v865_v34, %v2177_v43 }
 0x11b   : > { %v2144_v48 = vpop.xlane.xlu0 %809  ;;  %v882_v2 = vadd.f32 117.62413, %v2142_v49  ;;  %v1062_v59 = vsel %vm962_vm4, %v1061_v8, %v1057_v36 }
 0x11c   : > { %v866_v19 = vadd.f32 117.62413, %v2144_v48  ;;  %v1067_v28 = vsel %vm969_vm5, %v1066_v58, %v1062_v59  ;;  %v970_v37 = vsel %vm969_vm5, %v968_v33, %v963_v16 }
 0x11e   : > { %v975_v31 = vrot.slane %v866_v19, %v2180_v39 }
 0x11f   : > { %v2146_v61 = vpop.xlane.xlu1 %843 }
 0x120   : > { %v883_v27 = vadd.f32 117.62413, %v2146_v61  ;;  %v1071_v61 = vrot.slane %v882_v2, %v2180_v39  ;;  %v977_v51 = vsel %vm976_vm6, %v975_v31, %v970_v37 }
 0x122   : > { %v2148_v56 = vpop.xlane.xlu0 %811  ;;  %v1076_v38 = vrot.slane %v883_v27, %v2183_v42  ;;  %v1072_v50 = vsel %vm976_vm6, %v1071_v61, %v1067_v28 }
 0x123   : > { %v867_v25 = vadd.f32 117.62413, %v2148_v56 }
 0x125   : > { %v2152_v4 = vpop.xlane.xlu1 %845 }
 0x126   : > { %v2154_v24 = vpop.xlane.xlu0 %813  ;;  %v884_v49 = vadd.f32 117.62413, %v2152_v4 }
 0x127   : > { %v868_v30 = vadd.f32 117.62413, %v2154_v24 }
 0x128   : > { %v1081_v60 = vrot.slane %v884_v49, %v2186_v26 }
 0x129   : > { %v2160_v5 = vpop.xlane.xlu1 %847 }
 0x12a   : > { %v2171_v17 = vpop.xlane.xlu0 %815  ;;  %v885_v43 = vadd.f32 117.62413, %v2160_v5  ;;  %v982_v5 = vrot.slane %v867_v25, %v2183_v42  ;;  %v1077_v42 = vsel %vm983_vm7, %v1076_v38, %v1072_v50 }
 0x12b   : > { %v869_v32 = vadd.f32 117.62413, %v2171_v17  ;;  %v989_v17 = vrot.slane %v868_v30, %v2186_v26  ;;  %v1082_v52 = vsel %vm990_vm8, %v1081_v60, %v1077_v42 }
 0x12c   : > { %v984_v1 = vsel %vm983_vm7, %v982_v5, %v977_v51 }
 0x12d   : > { %v2194_v20 = vpop.xlane.xlu1 %849  ;;  %v996_v23 = vrot.slane %v869_v32, %v2189_v12 }
 0x12e   : > { %v2196_v46 = vpop.xlane.xlu0 %817  ;;  %v886_v56 = vadd.f32 117.62413, %v2194_v20  ;;  %v1086_v20 = vrot.slane %v885_v43, %v2189_v12  ;;  %v991_v12 = vsel %vm990_vm8, %v989_v17, %v984_v1 }
 0x12f   : > { %v870_v24 = vadd.f32 117.62413, %v2196_v46  ;;  %v998_v40 = vsel %vm997_vm9, %v996_v23, %v991_v12 }
 0x130   : > { %v1091_v46 = vrot.slane %v886_v56, %v2192_v29  ;;  %v1087_v55 = vsel %vm997_vm9, %v1086_v20, %v1082_v52 }
 0x131   : > { %v852_v57 = vpop.xlane.xlu1 %851 }
 0x132   : > { %v820_v14 = vpop.xlane.xlu0 %819  ;;  %v887_v41 = vadd.f32 117.62413, %v852_v57  ;;  %v1003_v57 = vrot.slane %v870_v24, %v2192_v29  ;;  %v1092_v63 = vsel %vm1004_vm10, %v1091_v46, %v1087_v55 }
 0x133   : > { %v871_v44 = vadd.f32 117.62413, %v820_v14 }
 0x134   : > { %v1096_v26 = vrot.slane %v887_v41, %v2199_v13  ;;  %v1005_v21 = vsel %vm1004_vm10, %v1003_v57, %v998_v40 }
 0x135   : > { %v854_v7 = vpop.xlane.xlu1 %853  ;;  %v1010_v14 = vrot.slane %v871_v44, %v2199_v13 }
 0x136   : > { %v822_v48 = vpop.xlane.xlu0 %821  ;;  %v888_v39 = vadd.f32 117.62413, %v854_v7  ;;  %v1097_v22 = vsel %vm1011_vm11, %v1096_v26, %v1092_v63 }
 0x137   : > { %v872_v47 = vadd.f32 117.62413, %v822_v48  ;;  %v1012_v7 = vsel %vm1011_vm11, %v1010_v14, %v1005_v21 }
 0x138   : > { %v1101_v54 = vrot.slane %v888_v39, %v2203_v35 }
 0x139   : > { %v856_v4 = vpop.xlane.xlu1 %855  ;;  %v1017_v18 = vrot.slane %v872_v47, %v2203_v35 }
 0x13a   : > { %v889_v10 = vadd.f32 117.62413, %v856_v4  ;;  %v1102_v35 = vsel %vm1018_vm12, %v1101_v54, %v1097_v22 }
 0x13c   : > { %v1106_v29 = vrot.slane %v889_v10, %v2212_v15 }
 0x13e   : > { %v824_v3 = vpop.xlane.xlu0 %823  ;;  %v1107_v6 = vsel %vm1025_vm13, %v1106_v29, %v1102_v35 }
 0x13f   : > { %v873_v53 = vadd.f32 117.62413, %v824_v3 }
 0x141   : > { %v858_v34 = vpop.xlane.xlu1 %857  ;;  %v1024_v8 = vrot.slane %v873_v53, %v2212_v15  ;;  %v1019_v15 = vsel %vm1018_vm12, %v1017_v18, %v1012_v7 }
 0x142   : > { %v890_v62 = vadd.f32 117.62413, %v858_v34  ;;  %v826_v13 = vpop.xlane.xlu0 %825 }
 0x143   : > { %v874_v58 = vadd.f32 117.62413, %v826_v13  ;;  %v1026_v19 = vsel %vm1025_vm13, %v1024_v8, %v1019_v15 }
 0x144   : > { %v1111_v0 = vrot.slane %v890_v62, %v2222_v9 }
 0x145   : > { %v1031_v2 = vrot.slane %v874_v58, %v2222_v9 }
 0x146   : > { %v1112_v45 = vsel %vm1032_vm14, %v1111_v0, %v1107_v6 }
 0x147   : > { %v1033_v36 = vsel %vm1032_vm14, %v1031_v2, %v1026_v19 }
 0x148   : > { %v1114_v33 = vsel %vm1113_vm15, %v1112_v45, %v1033_v36 }
 0x149   : > { %1116 = vst [vmem:[%s372_s1] sm:$0x3] %v1114_v33 }
 0x14a   : > { %1478 = shalt.err (!%p1475_p8)
}
 0x14b   : > { %s1479_s7 = scalar_lea.hbm %s2287_s30, 32  ;;  %s1483_s10 = scalar_lea.hbm %s2339_s3, 64 }
 0x14c   : > { %p1480_p10 = scmp.ne.s32.totalorder %s2287_s30, %s1479_s7  ;;  %p1484_p1 = scmp.lt.u32.totalorder %s2287_s30, %s2339_s3 }
 0x14d   : > { %p1485_p2 = scmp.lt.u32.totalorder %s1483_s10, %s1479_s7  ;;  %p1487_p4 = scmp.lt.u32.totalorder %s1479_s7, %s2287_s30 }
 0x14e   : > { %p1481_p13 = pnand %p1480_p10, %p1649_p9 }
 0x14f   : > { %p1486_p3 = por %p1485_p2, %p1484_p1 }
 0x150   : > { %p1482_p0 = pneg %p1481_p13 }
 0x151   : > { %p1488_p5 = por %p1487_p4, %p1486_p3 }
 0x153   : > { %p1489_p6 = pnand %p1488_p5, %p1482_p0 }
 0x155   : > { %1492 = shalt.err (!%p1489_p6)
}
 0x156   : > { %1326 = dma.vmem_to_hbm [thread:$0]  (%p1649_p9), %s2289_s23, 32, %s2287_s30, %s1118_s15  }
 0x157 PF: > { %s1145_s9 = sand.u32 1, %s1531_s12   ;;  %p1329_p7 = pnand %p1269_p12, %p1656_p11 }
 0x158   : > { %s1146_s21 = scalar_lea.sflag [#allocation4], %s1145_s9 }
 0x159   : > { %1526 = dma.done.wait (!%p1329_p7), %s1146_s21, 32  }
 0x15a   : > { %1528 = vsyncadd (!%p1329_p7), %s1146_s21, 4294967264  ;;  %s22_s17 = sadd.s32 1, %s1551_s17   ;;  %s2348_s12 = smov %s1535_s13 }
 0x15b   : > { %p19_p8 = scmp.ge.s32.totalorder %s22_s17, 4   ;;  %s2349_s13 = smov %s1539_s14 }
 0x15c   : > { %s2350_s14 = smov %s1654_s26  ;;  %s2351_s15 = smov %s1547_s16 }
 0x15d   : > { %s2352_s16 = smov %s2354_s20  ;;  %21 = sbr.rel (!%p19_p8) target bundleno = 11 (0xb), region = 116 }
 0x164   :  { %1151 = vsyncpa [#allocation3], 1 }
 0x165   :  { %1153 = vsyncpa [#allocation3 + $0x1], 1 }
 0x166   :  { %1154 = vsyncpa [#allocation6], 1 }
 0x167   :  { %1156 = vsyncpa [#allocation6 + $0x1], 1 }
 0x168   :  { %1157 = vsyncpa [#allocation4], 1 }
 0x169   :  { %1159 = vsyncpa [#allocation4 + $0x1], 1 }

</bundles_post_ra>
